<compile_context>
chip_gen: v7x
topology: tpu7x:2x2x1
jax: 0.10.0
libtpu: 0.0.40
codegen_flags: <defaults>
</compile_context>

<pallas_src>
import jax
import jax.numpy as jnp
from jax.experimental import pallas as pl
from jax.experimental.pallas import tpu as pltpu

LATENT_SIZE = 100


def _round_up(x, m):
    return ((x + m - 1) // m) * m


# ----------------------------------------------------------------------------
# Kernel: one fused (dot -> bias -> relu -> dot -> bias -> tanh) per batch tile
# ----------------------------------------------------------------------------
def cvae_decoder_kernel(x_ref, w1_ref, b1_ref, w2_ref, b2_ref, out_ref):
    # Layer 1: single MXU dot over the packed (latent+condition) contraction.
    # K is not 128-aligned; Mosaic masks the contraction remainder.
    h = jnp.dot(x_ref[...], w1_ref[...], preferred_element_type=jnp.float32)
    h = jnp.maximum(h + b1_ref[...], 0.0)            # bias + ReLU in f32 (VPU)

    # Layer 2: cast only the MXU LHS operand to the weight dtype; accumulate f32.
    o = jnp.dot(h.astype(w2_ref.dtype), w2_ref[...],
                preferred_element_type=jnp.float32)
    out_ref[...] = jnp.tanh(o + b2_ref[...]).astype(out_ref.dtype)


# ----------------------------------------------------------------------------
# Parameter preparation (done ONCE, outside the hot path)
# ----------------------------------------------------------------------------
def prepare_params(w1, b1, w2, b2, *, matmul_dtype=jnp.bfloat16):
    """w1: [LATENT+cond, hidden] (merged first-layer weight), w2: [hidden, out].

    Weights are cast once to the MXU operand dtype (bf16 by default: native on
    the v5e/v6e/v7x MXUs and halves weight/activation DMA bytes).  Biases stay
    f32 so bias-add / ReLU / tanh run in f32.  No shape padding is needed:
    every operand is passed to the kernel as a full-dim block.
    """
    hidden = w1.shape[1]
    out = w2.shape[1]
    return {
        "w1": jnp.asarray(w1, matmul_dtype),                       # [K, H]
        "b1": jnp.asarray(b1, jnp.float32).reshape(1, hidden),     # [1, H]
        "w2": jnp.asarray(w2, matmul_dtype),                       # [H, O]
        "b2": jnp.asarray(b2, jnp.float32).reshape(1, out),        # [1, O]
    }


# ----------------------------------------------------------------------------
# Forward wrapper
# ----------------------------------------------------------------------------
def cvae_decoder_forward(inp, cond, params, *, block_rows=1024):
    """inp: [B, LATENT_SIZE] f32, cond: [B, C] f32 -> [B, output_size] f32."""
    B = inp.shape[0]
    in1, hidden = params["w1"].shape
    out = params["w2"].shape[1]
    dt = params["w1"].dtype
    assert inp.shape[1] + cond.shape[1] == in1

    # bf16 packs 16 rows per vreg sublane group; f32 packs 8.
    sub = 16 if dt == jnp.bfloat16 else 8

    # Batch tiling: cap tile rows at block_rows, round the tile to the sublane
    # pack, and use >=2 tiles when the batch is big enough to split so the
    # "parallel" batch axis can feed both TensorCores on v7x.  This avoids the
    # old near-2x ragged-tile padding (e.g. B=513 -> b_pad=544, not 1024).
    n_tiles = max(pl.cdiv(B, block_rows), 2 if B >= 2 * sub else 1)
    tm = _round_up(pl.cdiv(B, n_tiles), sub)
    b_pad = _round_up(B, tm)
    grid = (b_pad // tm,)

    # Single packing op: concat + cast (+ batch-row pad) fuse into ONE XLA
    # write of [b_pad, in1] in the matmul dtype.  No lane-axis zero padding.
    x = jnp.concatenate([inp, cond], axis=1).astype(dt)
    if b_pad > B:
        x = jnp.pad(x, ((0, b_pad - B), (0, 0)))

    out_arr = pl.pallas_call(
        cvae_decoder_kernel,
        out_shape=jax.ShapeDtypeStruct((b_pad, out), jnp.float32),
        grid=grid,
        in_specs=[
            pl.BlockSpec((tm, in1), lambda i: (i, 0)),      # packed activations
            pl.BlockSpec((in1, hidden), lambda i: (0, 0)),  # W1 (resident)
            pl.BlockSpec((1, hidden), lambda i: (0, 0)),    # b1 (resident)
            pl.BlockSpec((hidden, out), lambda i: (0, 0)),  # W2 (resident)
            pl.BlockSpec((1, out), lambda i: (0, 0)),       # b2 (resident)
        ],
        # Real output width (no 128-wide zero padding -> ~8x fewer store bytes
        # for small output_size, and no external lane slice).
        out_specs=pl.BlockSpec((tm, out), lambda i: (i, 0)),
        compiler_params=pltpu.CompilerParams(
            dimension_semantics=("parallel",),              # megacore on v7x
        ),
    )(x, params["w1"], params["b1"], params["w2"], params["b2"])

    # Only the batch-pad rows need trimming (cheap; absent when B % tm == 0).
    return out_arr[:B] if b_pad > B else out_arr


# ----------------------------------------------------------------------------
# Reference + init (PyTorch-equivalent math)
# ----------------------------------------------------------------------------
def init_params(key, hidden_size, output_size, condition_size):
    """nn.Linear-style init; weights stored transposed ([in, out])."""
    in1 = LATENT_SIZE + condition_size
    k1, k2, k3, k4 = jax.random.split(key, 4)
    bound1 = 1.0 / jnp.sqrt(in1)
    bound2 = 1.0 / jnp.sqrt(hidden_size)
    w1 = jax.random.uniform(k1, (in1, hidden_size), jnp.float32, -bound1, bound1)
    b1 = jax.random.uniform(k2, (1, hidden_size), jnp.float32, -bound1, bound1)
    w2 = jax.random.uniform(k3, (hidden_size, output_size), jnp.float32, -bound2, bound2)
    b2 = jax.random.uniform(k4, (1, output_size), jnp.float32, -bound2, bound2)
    return w1, b1, w2, b2


def reference_forward(inp, cond, w1, b1, w2, b2):
    x = jnp.concatenate([inp, cond], axis=1)
    h = jnp.maximum(x @ w1 + b1, 0.0)
    return jnp.tanh(h @ w2 + b2)


if __name__ == "__main__":
    batch = 2
    hidden_size = 32
    output_size = 16
    condition_size = 4

    key = jax.random.PRNGKey(0)
    kp, ki, kc, ki2, kc2 = jax.random.split(key, 5)

    w1, b1, w2, b2 = init_params(kp, hidden_size, output_size, condition_size)
    inp = jax.random.normal(ki, (batch, LATENT_SIZE), jnp.float32)
    cond = jax.random.normal(kc, (batch, condition_size), jnp.float32)
    ref = reference_forward(inp, cond, w1, b1, w2, b2)

    # Default path: bf16 MXU operands, f32 accumulation / elementwise.
    params_bf16 = prepare_params(w1, b1, w2, b2)  # matmul_dtype=bf16 default
    out_bf16 = jax.block_until_ready(cvae_decoder_forward(inp, cond, params_bf16))
    assert out_bf16.shape == (batch, output_size)
    assert jnp.allclose(out_bf16, ref, atol=5e-2), "bf16 mismatch vs reference"

    # Bit-faithful f32 path (matches the PyTorch reference tightly).
    params_f32 = prepare_params(w1, b1, w2, b2, matmul_dtype=jnp.float32)
    out_f32 = jax.block_until_ready(cvae_decoder_forward(inp, cond, params_f32))
    assert out_f32.shape == (batch, output_size)
    assert jnp.allclose(out_f32, ref, atol=1e-4, rtol=1e-4), "f32 mismatch vs reference"

    # Larger ragged batch: exercises multi-tile grid (2 tiles -> dual-TC on
    # v7x), batch-row padding and the trailing row slice.
    B2 = 100
    inp2 = jax.random.normal(ki2, (B2, LATENT_SIZE), jnp.float32)
    cond2 = jax.random.normal(kc2, (B2, condition_size), jnp.float32)
    ref2 = reference_forward(inp2, cond2, w1, b1, w2, b2)
    out2 = jax.block_until_ready(cvae_decoder_forward(inp2, cond2, params_bf16))
    assert out2.shape == (B2, output_size)
    assert jnp.allclose(out2, ref2, atol=5e-2), "bf16 batch-100 mismatch vs reference"

    print("KERNEL_OK")
</pallas_src>

<mosaic_0001>
module attributes {stable_mosaic.version = 11 : i64} {
  func.func @cvae_decoder_kernel(%arg0: i32, %arg1: memref<16x104xbf16, #tpu.memory_space<vmem>>, %arg2: memref<104x32xbf16, #tpu.memory_space<vmem>>, %arg3: memref<1x32xf32, #tpu.memory_space<vmem>>, %arg4: memref<32x16xbf16, #tpu.memory_space<vmem>>, %arg5: memref<1x16xf32, #tpu.memory_space<vmem>>, %arg6: memref<16x16xf32, #tpu.memory_space<vmem>>) attributes {dimension_semantics = [#tpu.dimension_semantics<parallel>], iteration_bounds = array<i64: 1>, scalar_prefetch = 0 : i64, scratch_operands = 0 : i64, tpu.core_type = #tpu.core_type<tc>, window_params = [{transform_indices = @transform_0, window_bounds = array<i64: 16, 104>}, {pipeline_mode = #tpu.pipeline_mode<synchronous>, transform_indices = @transform_1, window_bounds = array<i64: 104, 32>}, {pipeline_mode = #tpu.pipeline_mode<synchronous>, transform_indices = @transform_2, window_bounds = array<i64: 1, 32>}, {pipeline_mode = #tpu.pipeline_mode<synchronous>, transform_indices = @transform_3, window_bounds = array<i64: 32, 16>}, {pipeline_mode = #tpu.pipeline_mode<synchronous>, transform_indices = @transform_4, window_bounds = array<i64: 1, 16>}, {transform_indices = @transform_5, window_bounds = array<i64: 16, 16>}]} {
    %c0 = arith.constant 0 : index
    %c0_0 = arith.constant 0 : index
    %0 = vector.load %arg1[%c0, %c0_0] : memref<16x104xbf16, #tpu.memory_space<vmem>>, vector<16x104xbf16>
    %c0_1 = arith.constant 0 : index
    %c0_2 = arith.constant 0 : index
    %1 = vector.load %arg2[%c0_1, %c0_2] : memref<104x32xbf16, #tpu.memory_space<vmem>>, vector<104x32xbf16>
    %cst = arith.constant dense<0.000000e+00> : vector<16x32xf32>
    %2 = tpu.matmul %0, %1, %cst {dimension_numbers = #tpu.dot_dimension_numbers<[1], [0], [0], [1], [0, 0, 1, 1], [], []>} : vector<16x104xbf16>, vector<104x32xbf16>, vector<16x32xf32> -> vector<16x32xf32>
    %c0_3 = arith.constant 0 : index
    %c0_4 = arith.constant 0 : index
    %3 = vector.load %arg3[%c0_3, %c0_4] : memref<1x32xf32, #tpu.memory_space<vmem>>, vector<1x32xf32>
    %4 = vector.broadcast %3 : vector<1x32xf32> to vector<16x32xf32>
    %5 = arith.addf %2, %4 : vector<16x32xf32>
    %cst_5 = arith.constant 0.000000e+00 : f32
    %6 = vector.broadcast %cst_5 : f32 to vector<16x32xf32>
    %7 = arith.maximumf %5, %6 : vector<16x32xf32>
    %8 = arith.truncf %7 : vector<16x32xf32> to vector<16x32xbf16>
    %c0_6 = arith.constant 0 : index
    %c0_7 = arith.constant 0 : index
    %9 = vector.load %arg4[%c0_6, %c0_7] : memref<32x16xbf16, #tpu.memory_space<vmem>>, vector<32x16xbf16>
    %cst_8 = arith.constant dense<0.000000e+00> : vector<16x16xf32>
    %10 = tpu.matmul %8, %9, %cst_8 {dimension_numbers = #tpu.dot_dimension_numbers<[1], [0], [0], [1], [0, 0, 1, 1], [], []>} : vector<16x32xbf16>, vector<32x16xbf16>, vector<16x16xf32> -> vector<16x16xf32>
    %c0_9 = arith.constant 0 : index
    %c0_10 = arith.constant 0 : index
    %11 = vector.load %arg5[%c0_9, %c0_10] : memref<1x16xf32, #tpu.memory_space<vmem>>, vector<1x16xf32>
    %12 = vector.broadcast %11 : vector<1x16xf32> to vector<16x16xf32>
    %13 = arith.addf %10, %12 : vector<16x16xf32>
    %14 = math.tanh %13 : vector<16x16xf32>
    %c0_11 = arith.constant 0 : index
    %c0_12 = arith.constant 0 : index
    %15 = vector.load %arg6[%c0_11, %c0_12] : memref<16x16xf32, #tpu.memory_space<vmem>>, vector<16x16xf32>
    tpu.vector_store %arg6[%c0_11, %c0_12], %14 {strides = array<i32>} : memref<16x16xf32, #tpu.memory_space<vmem>>, vector<16x16xf32>,
    return
  }
  func.func @transform_0(%arg0: i32) -> (i32, i32) {
    %c0_i32 = arith.constant 0 : i32
    %c0_i32_0 = arith.constant 0 : i32
    return %arg0, %c0_i32 : i32, i32
  }
  func.func @transform_1(%arg0: i32) -> (i32, i32) {
    %c0_i32 = arith.constant 0 : i32
    %c0_i32_0 = arith.constant 0 : i32
    %c0_i32_1 = arith.constant 0 : i32
    return %c0_i32, %c0_i32_0 : i32, i32
  }
  func.func @transform_2(%arg0: i32) -> (i32, i32) {
    %c0_i32 = arith.constant 0 : i32
    %c0_i32_0 = arith.constant 0 : i32
    %c0_i32_1 = arith.constant 0 : i32
    return %c0_i32, %c0_i32_0 : i32, i32
  }
  func.func @transform_3(%arg0: i32) -> (i32, i32) {
    %c0_i32 = arith.constant 0 : i32
    %c0_i32_0 = arith.constant 0 : i32
    %c0_i32_1 = arith.constant 0 : i32
    return %c0_i32, %c0_i32_0 : i32, i32
  }
  func.func @transform_4(%arg0: i32) -> (i32, i32) {
    %c0_i32 = arith.constant 0 : i32
    %c0_i32_0 = arith.constant 0 : i32
    %c0_i32_1 = arith.constant 0 : i32
    return %c0_i32, %c0_i32_0 : i32, i32
  }
  func.func @transform_5(%arg0: i32) -> (i32, i32) {
    %c0_i32 = arith.constant 0 : i32
    %c0_i32_0 = arith.constant 0 : i32
    return %arg0, %c0_i32 : i32, i32
  }
}

</mosaic_0001>

<bundles_post_ra>
// kernel: tpu_custom_call.1
= control target key start
LH: loop header
LB: loop body
LE: loop exit
PB: predicated region body
PF: predicated region fallthrough
CT: control target
= control target key end

     0   :  { %v323_v1 = vmov 0.0   ;;  %vm324_vm0 = vmmov 0   ;;  %s406_s0 = inlined_call_operand.vmem [shape: bf16[16,104], index: 0, kind: input, shape index: {}]   ;;  %s407_s1 = inlined_call_operand.vmem [shape: bf16[104,32], index: 1, kind: input, shape index: {}]   ;;  %s408_s2 = inlined_call_operand.vmem [shape: f32[1,32], index: 2, kind: input, shape index: {}]   ;;  %s409_s3 = inlined_call_operand.vmem [shape: bf16[32,16], index: 3, kind: input, shape index: {}]   ;;  %s410_s4 = inlined_call_operand.vmem [shape: f32[1,16], index: 4, kind: input, shape index: {}]   ;;  %s411_s5 = inlined_call_operand.hbm [shape: f32[16,16], index: 5, kind: output, shape index: {}]  }
   0x1   :  { %v285_v0 = vld [vmem:[%s407_s1] sm:$0xff]   ;;  %254 = vmatprep.subr.bf16.mxu0 %v323_v1  ;;  %272 = vmatprep.subr.bf16.mxu1 %v323_v1  ;;  %v286_v2 = vld [vmem:[%s407_s1 + $0x8] sm:$0xff]   ;;  %v287_v3 = vld [vmem:[%s407_s1 + $0x10] sm:$0xff]  }
   0x2   :  { %255 = vmatpush3.bf16.msra.mxu0 %v285_v0  ;;  %268 = vmatprep.mubr.msk.bf16.mxu0 %vm324_vm0, %v323_v1 }
   0x3   :  { %256 = vmatprep.subr.bf16.mxu0 %v323_v1  ;;  %276 = vmatprep.mubr.msk.bf16.mxu1 %vm324_vm0, %v323_v1 }
   0x6   :  { %257 = vmatpush3.bf16.msra.mxu0 %v286_v2 }
   0x7   :  { %258 = vmatprep.subr.bf16.mxu0 %v323_v1 }
   0x8   :  { %10 = vsyncpa [#allocation3], 0  ;;  %v288_v4 = vld [vmem:[%s407_s1 + $0x18] sm:$0xff]   ;;  %v289_v5 = vld [vmem:[%s407_s1 + $0x20] sm:$0xff]   ;;  %vm92_vm1 = vcmask 1043456   ;;  %vm88_vm2 = vcmask 850944  }
   0x9   :  { %v290_v6 = vld [vmem:[%s407_s1 + $0x28] sm:$0xff]   ;;  %v291_v7 = vld [vmem:[%s407_s1 + $0x30] ss:$0 sps:$4 sm:$0xff]   ;;  %v292_v9 = vld [vmem:[%s406_s0] sm:$0xff]   ;;  %vm163_vm3 = vcmask 261120   ;;  %vm210_vm4 = vcmask 130048  }
   0xa   :  { %259 = vmatpush3.bf16.msra.mxu0 %v287_v3  ;;  %v94_v8 = vsel %vm92_vm1, %v291_v7, 0  ;;  %v293_v10 = vld [vmem:[%s409_s3] sm:$0xff]   ;;  %v294_v11 = vld [vmem:[%s409_s3 + $0x8] sm:$0xff]  }
   0xb   :  { %260 = vmatprep.subr.bf16.mxu0 %v323_v1  ;;  %273 = vmatpush3.bf16.msra.mxu1 %v293_v10  ;;  %v229_v12 = vld [vmem:[%s408_s2] ss:$0 sm:$0xff]  ;;  %s325_s2 = smov [#allocation2]  }
   0xc   :  { %274 = vmatprep.subr.bf16.mxu1 %v323_v1  ;;  %v239_v22 = vld [vmem:[%s410_s4] ss:$0 sm:$0xff]  ;;  %s218_s3 = sshll.u32 %s325_s2, 4  ;;  %s219_s3 = int_to_ptr.vmem [resolvable:$true] %s218_s3 }
   0xd   :  { %s299_s15 = scalar_lea.vmem %s219_s3, 256  ;;  %p304_p1 = scmp.lt.s32.totalorder %s219_s3, %s219_s3 }
   0xe   :  { %261 = vmatpush3.bf16.msra.mxu0 %v288_v4  ;;  %p300_p0 = scmp.ne.s32.totalorder %s219_s3, %s299_s15  ;;  %p305_p2 = scmp.lt.s32.totalorder %s299_s15, %s299_s15 }
   0xf   :  { %262 = vmatprep.subr.bf16.mxu0 %v323_v1  ;;  %275 = vmatpush3.bf16.msra.mxu1 %v294_v11 }
  0x10   :  { %p306_p3 = por %p305_p2, %p304_p1 }
  0x12   :  { %263 = vmatpush3.bf16.msra.mxu0 %v289_v5  ;;  %p307_p4 = pnand %p306_p3, %p300_p0 }
  0x13   :  { %264 = vmatprep.subr.bf16.mxu0 %v323_v1 }
  0x16   :  { %265 = vmatpush3.bf16.msra.mxu0 %v290_v6 }
  0x17   :  { %266 = vmatprep.subr.bf16.mxu0 %v323_v1 }
  0x1a   :  { %267 = vmatpush3.bf16.msra.mxu0 %v94_v8 }
  0x1d   :  { %269 = vmatmul.mubr.msk.bf16.vlgmr.msra.gmra.mrb[0].mxu0 %vm88_vm2, %v292_v9 }
  0xf0   :  { %v130_v13 = vpop.f32.mrb[0].mxu0 }
  0xf1   :  { %v131_v14 = vadd.f32 %v229_v12, %v130_v13  ;;  %v270_v15 = vpop.f32.mrb[1].mxu0 }
  0xf2   :  { %v133_v16 = vpop.f32.mrb[2].mxu0 }
  0xf3   :  { %v134_v17 = vadd.f32 %v229_v12, %v133_v16  ;;  %v271_v18 = vpop.f32.mrb[3].mxu0  ;;  %v137_v19 = vmax.f32 %v131_v14, 0.0 }
  0xf5   :  { %v138_v20 = vmax.f32 %v134_v17, 0.0 }
  0xf7   :  { %v139_v21 = vpack.c.bf16 %v138_v20, %v137_v19 }
  0xf9   :  { %277 = vmatmul.mubr.msk.bf16.vlgmr.msra.gmra.mrb[0].mxu1 %vm163_vm3, %v139_v21 }
 0x1cc   :  { %v201_v23 = vpop.f32.mrb[0].mxu1 }
 0x1cd   :  { %v202_v24 = vadd.f32 %v239_v22, %v201_v23  ;;  %v278_v25 = vpop.f32.mrb[1].mxu1 }
 0x1ce   :  { %v204_v26 = vpop.f32.mrb[2].mxu1 }
 0x1cf   :  { %295 = vtanh.f32 %v202_v24  ;;  %v205_v27 = vadd.f32 %v239_v22, %v204_v26  ;;  %v279_v28 = vpop.f32.mrb[3].mxu1 }
 0x1d1   :  { %297 = vtanh.f32 %v205_v27 }
 0x1d9   :  { %v296_v29 = vpop.eup %295 }
 0x1da   :  { %211 = vst.msk [vmem:[#allocation2] sm:$0xff] %vm210_vm4, %v296_v29 }
 0x1db   :  { %v298_v30 = vpop.eup %297 }
 0x1dc   :  { %212 = vst.msk [vmem:[#allocation2 + $0x8] sm:$0xff] %vm210_vm4, %v298_v30 }
 0x1dd   :  { %310 = shalt.err (!%p307_p4)
}
 0x1de   :  { %s311_s17 = scalar_lea.hbm %s411_s5, 256 }
 0x1df   :  { %p312_p5 = scmp.ne.s32.totalorder %s411_s5, %s311_s17  ;;  %p315_p6 = scmp.lt.u32.totalorder %s311_s17, %s411_s5 }
 0x1e1   :  { %p317_p7 = pnand %p315_p6, %p312_p5 }
 0x1e3   :  { %320 = shalt.err (!%p317_p7)
}
 0x1e4   :  { %s326_s22 = smov 128   ;;  %s327_s23 = smov 8  }
 0x1e5   :  { %224 = dma.vmem_to_hbm [thread:$0]  %s219_s3, 256, %s411_s5, [#allocation3], %s326_s22, %s326_s22, %s327_s23  }
 0x1e6   :  { %321 = dma.done.wait [#allocation3], 256  }
 0x1e7   :  { %322 = vsyncadd [#allocation3], 4294967040 }
 0x1e8   :  { %228 = vsyncpa [#allocation3], 1 }

</bundles_post_ra>
